<compile_context>
chip_gen: v6e
topology: v6e:2x2x1
jax: 0.10.0
libtpu: 0.0.40
codegen_flags: <defaults>
</compile_context>

<pallas_src>
import math
from functools import partial

import jax
import jax.numpy as jnp
from jax.experimental import pallas as pl
from jax.experimental.pallas import tpu as pltpu


# ----------------------------------------------------------------------------
# Hardware-derived VMEM budgets (per-generation tile sizing)
# ----------------------------------------------------------------------------
def _vmem_capacity_bytes():
    try:
        info = pltpu.get_tpu_info()
        cap = int(getattr(info, "vmem_capacity_bytes", 0) or 0)
        if cap > 0:
            return cap
    except Exception:
        pass
    return 64 * 1024 * 1024  # conservative default = v7x physical


_VMEM_PHYS = _vmem_capacity_bytes()
# Budget used for tile sizing (the factor-2 double-buffering is accounted for
# explicitly below): v5e/v6e (128 MiB) -> 64 MiB, v7x (64 MiB) -> 32 MiB.
_TILE_BUDGET = min(_VMEM_PHYS // 2, 80 * 1024 * 1024)
_VMEM_LIMIT = int(min(_VMEM_PHYS * 3 // 4, 100 * 1024 * 1024))


# ----------------------------------------------------------------------------
# Pallas kernel: fused 1x1 conv (matmul) + bias + sigmoid + YOLO decode
# ----------------------------------------------------------------------------
def _head_kernel(x_ref, w_ref, c_ref, *out_refs, nx, inv_nx, sx, sy, with_raw):
    # x_ref : (Cin,  tl)   activations, channel-major (spatial on lanes), bf16
    # w_ref : (Cout, Cin)  1x1 conv weight, bf16
    # c_ref : (Cout, 8)    per-channel consts [bias, A, is_wh, is_x, is_y, 0, 0, 0]
    # out_refs: (raw_ref, dec_ref) or (dec_ref,)   each (Cout, tl)
    if with_raw:
        raw_ref, dec_ref = out_refs
    else:
        (dec_ref,) = out_refs
    tl = x_ref.shape[-1]

    c = c_ref[...]
    bias = c[:, 0:1]
    A = c[:, 1:2]
    is_wh = c[:, 2:3]
    is_x = c[:, 3:4]
    is_y = c[:, 4:5]

    # 1x1 conv == matmul over channels on the MXU; f32 accumulation/epilogue.
    acc = jnp.dot(w_ref[...], x_ref[...], preferred_element_type=jnp.float32)
    acc = acc + bias
    if with_raw:
        raw_ref[...] = acc.astype(raw_ref.dtype)       # pre-sigmoid head output

    sig = jax.nn.sigmoid(acc)

    # Grid-cell offsets computed in-kernel. p = absolute flattened spatial index.
    j = pl.program_id(1)
    lane = jax.lax.broadcasted_iota(jnp.int32, (1, tl), 1)
    p = (lane + j * tl).astype(jnp.float32)
    # floor((p+0.5)*inv_nx) gives exact gy while p < ~2^21: the 0.5/nx margin
    # dwarfs f32 rounding of the reciprocal-multiply.  Asserted in the wrapper.
    gy = jnp.floor((p + 0.5) * inv_nx)
    gx = p - gy * nx
    B = is_x * ((gx - 1.0) * sx) + is_y * ((gy - 1.0) * sy)

    # xy  : (sig*3 - 1 + grid) * stride == sig*(3*stride) + (grid-1)*stride
    # wh  : (sig*2)^2 * anchor          == sig^2 * (4*anchor)
    # conf:  sig                        == sig * 1 + 0
    dec = jnp.where(is_wh > 0.5, (sig * sig) * A, sig * A + B)
    dec_ref[...] = dec.astype(dec_ref.dtype)


def _choose_spatial_tile(L_pad, cin, cout, in_bytes, n_out, need_split):
    """Largest lane-dense (multiple-of-128) tile that fits the VMEM budget and
    divides the padded spatial extent; optionally forces >=2 chunks (v7x)."""
    per_lane = 2 * (cin * in_bytes + n_out * cout * 4)          # double-buffered streams
    fixed = 2 * (cout * cin * in_bytes + cout * 8 * 4)          # weight + consts
    max_tl = max(128, ((_TILE_BUDGET - fixed) // per_lane) // 128 * 128)
    cap = min(max_tl, L_pad)
    if need_split:
        cap = min(cap, max(128, L_pad // 2))
    t = (cap // 128) * 128
    while t >= 128 and L_pad % t != 0:
        t -= 128
    return max(t, 128)


def _run_level(x_cm, w, consts, *, nx, sx, sy, with_raw, raw_dtype):
    bs, cin, Lp = x_cm.shape
    cout = w.shape[0]
    in_bytes = jnp.dtype(x_cm.dtype).itemsize
    n_out = 2 if with_raw else 1
    # Guarantee >=2 parallel grid points so v7x megacore gets work even at bs=1
    # (one extra 0.35us grid step is free on single-TC v5e/v6e).
    need_split = (bs == 1)
    tl = _choose_spatial_tile(Lp, cin, cout, in_bytes, n_out, need_split)
    grid = (bs, Lp // tl)

    out_shape = [jax.ShapeDtypeStruct((bs, cout, Lp), jnp.float32)]
    out_specs = [pl.BlockSpec((None, cout, tl), lambda b, j: (b, 0, j))]
    if with_raw:
        out_shape = [jax.ShapeDtypeStruct((bs, cout, Lp), raw_dtype)] + out_shape
        out_specs = [pl.BlockSpec((None, cout, tl), lambda b, j: (b, 0, j))] + out_specs

    outs = pl.pallas_call(
        partial(_head_kernel, nx=float(nx), inv_nx=1.0 / float(nx),
                sx=float(sx), sy=float(sy), with_raw=with_raw),
        out_shape=tuple(out_shape),
        grid_spec=pltpu.PrefetchScalarGridSpec(
            num_scalar_prefetch=0,
            grid=grid,
            in_specs=[
                pl.BlockSpec((None, cin, tl), lambda b, j: (b, 0, j)),   # activations
                pl.BlockSpec((cout, cin), lambda b, j: (0, 0)),          # weight
                pl.BlockSpec((cout, 8), lambda b, j: (0, 0)),            # fused constants
            ],
            out_specs=tuple(out_specs),
        ),
        compiler_params=pltpu.CompilerParams(
            dimension_semantics=("parallel", "parallel"),
            vmem_limit_bytes=_VMEM_LIMIT),
    )(x_cm, w, consts)

    if with_raw:
        raw, dec = outs
    else:
        dec = outs[0] if isinstance(outs, (tuple, list)) else outs
        raw = None
    return raw, dec


# ----------------------------------------------------------------------------
# YoloV7Head (JAX / Pallas)
# ----------------------------------------------------------------------------
class YoloV7HeadPallas:
    def __init__(self, in_channels_list, anchors, num_classes, key,
                 compute_dtype=jnp.bfloat16):
        self.nl = len(anchors)
        self.na = len(anchors[0]) // 2
        self.nc = num_classes
        self.no = num_classes + 5
        self.compute_dtype = compute_dtype
        self.anchors = jnp.asarray(anchors, jnp.float32).reshape(self.nl, -1, 2)

        self.weights = []   # (Cout, Cin) per level, stored in compute_dtype (bf16)
        self.biases = []    # (Cout,)     per level, f32
        stride = [8, 16, 32]
        cout = self.na * self.no
        for li, cin in enumerate(in_channels_list):
            key, kw, kb = jax.random.split(key, 3)
            w = 0.05 * jax.random.normal(kw, (cout, cin), jnp.float32)
            b = 0.01 * jax.random.normal(kb, (cout,), jnp.float32)
            # reset_parameters(): objectness / class bias priors
            b2 = b.reshape(self.na, self.no)
            b2 = b2.at[:, 4].add(math.log(8.0 / (640.0 / stride[li]) ** 2))
            b2 = b2.at[:, 5:5 + self.nc].add(math.log(0.6 / (self.nc - 0.99999)))
            self.weights.append(w.astype(self.compute_dtype))
            self.biases.append(b2.reshape(-1))

    def _consts(self, i, sx, sy):
        na, no = self.na, self.no
        cout = na * no
        o_idx = jnp.arange(cout) % no
        a_idx = jnp.arange(cout) // no
        anc = self.anchors[i]                        # (na, 2)
        aw, ah = anc[a_idx, 0], anc[a_idx, 1]
        A = jnp.where(o_idx == 0, 3.0 * sx,
            jnp.where(o_idx == 1, 3.0 * sy,
            jnp.where(o_idx == 2, 4.0 * aw,
            jnp.where(o_idx == 3, 4.0 * ah, 1.0)))).astype(jnp.float32)
        is_wh = ((o_idx == 2) | (o_idx == 3)).astype(jnp.float32)
        is_x = (o_idx == 0).astype(jnp.float32)
        is_y = (o_idx == 1).astype(jnp.float32)
        zero = jnp.zeros((cout,), jnp.float32)
        return jnp.stack([self.biases[i], A, is_wh, is_x, is_y, zero, zero, zero],
                         axis=1)

    def __call__(self, xs, H, W, *, return_raw=True, raw_dtype=jnp.float32,
                 channel_major=False):
        """xs: list of NCHW feature maps.

        Default (return_raw=True, channel_major=False): returns (z_cat, x_list)
        with the exact eval-mode layouts of the PyTorch module.

        Fast inference path (return_raw=False, channel_major=True): no raw
        materialisation and no wrapper relayouts -- decoded boxes are returned
        per level as (B, na*no, ny*nx) channel-major tensors for the consumer
        (e.g. NMS) to transpose once, if at all.
        """
        na, no = self.na, self.no

        x_out, z = [], []
        for i in range(self.nl):
            x = xs[i]
            bs, cin, ny, nx = x.shape
            L = ny * nx
            assert L < (1 << 21), "in-kernel f32 floor decode assumes p < 2^21"
            sx, sy = float(W) / nx, float(H) / ny

            # channel-major flatten (pure reshape, no transpose); bf16 cast of the
            # activation stream (largest HBM read; matmul accumulates in f32).
            x_cm = x.reshape(bs, cin, L).astype(self.compute_dtype)
            Lp = ((L + 127) // 128) * 128               # lane-dense tiles / stores
            if Lp != L:
                x_cm = jnp.pad(x_cm, ((0, 0), (0, 0), (0, Lp - L)))

            raw, dec = _run_level(x_cm, self.weights[i], self._consts(i, sx, sy),
                                  nx=nx, sx=sx, sy=sy,
                                  with_raw=return_raw, raw_dtype=raw_dtype)
            if Lp != L:
                dec = dec[..., :L]
                if raw is not None:
                    raw = raw[..., :L]

            if channel_major:
                z.append(dec)                           # (B, na*no, ny*nx), no relayout
                if return_raw:
                    x_out.append(raw)
            else:
                if return_raw:
                    # raw (B, na*no, L) -> (B, na, ny, nx, no)   (torch eval layout)
                    x_out.append(raw.reshape(bs, na, no, ny, nx)
                                    .transpose(0, 1, 3, 4, 2))
                # dec -> (B, na*ny*nx, no)
                z.append(dec.reshape(bs, na, no, L)
                            .transpose(0, 1, 3, 2)
                            .reshape(bs, na * L, no))

        # TODO(synk): fuse the three detection levels into one pallas_call
        # ((level, spatial-chunk) as a single parallel grid axis with per-level
        # W/consts selected via scalar prefetch) to amortise the 3x launch
        # overhead and give v7x megacore a level axis to shard.
        if channel_major:
            return z, (x_out if return_raw else None)
        return jnp.concatenate(z, axis=1), (x_out if return_raw else None)


# ----------------------------------------------------------------------------
# Pure-JAX reference (for verification; uses the same bf16-cast operands)
# ----------------------------------------------------------------------------
def _reference(head, xs, H, W):
    na, no = head.na, head.no
    x_out, z, dec_cm = [], [], []
    for i in range(head.nl):
        x = xs[i]
        bs, cin, ny, nx = x.shape
        w = head.weights[i].astype(jnp.float32)
        b = head.biases[i]
        xr = x.astype(head.compute_dtype).astype(jnp.float32)
        y = jnp.einsum('bchw,oc->bohw', xr, w,
                       precision=jax.lax.Precision.HIGHEST) + b[None, :, None, None]
        y = y.reshape(bs, na, no, ny, nx).transpose(0, 1, 3, 4, 2)
        x_out.append(y)

        sx, sy = float(W) / nx, float(H) / ny
        yv, xv = jnp.meshgrid(jnp.arange(ny), jnp.arange(nx), indexing='ij')
        grid = jnp.stack((xv, yv), -1).astype(jnp.float32)       # (ny, nx, 2)
        sig = jax.nn.sigmoid(y)
        xy = (sig[..., 0:2] * 3 - 1 + grid[None, None]) * jnp.array([sx, sy])
        wh = (sig[..., 2:4] * 2) ** 2 * head.anchors[i][None, :, None, None, :]
        conf = sig[..., 4:]
        dec = jnp.concatenate((xy, wh, conf), -1)                # (bs, na, ny, nx, no)
        z.append(dec.reshape(bs, na * ny * nx, no))
        dec_cm.append(dec.transpose(0, 1, 4, 2, 3).reshape(bs, na * no, ny * nx))
    return jnp.concatenate(z, 1), x_out, dec_cm


# ----------------------------------------------------------------------------
if __name__ == "__main__":
    key = jax.random.PRNGKey(0)

    in_channels_list = [16, 32, 64]
    anchors = [[12, 16, 19, 36, 40, 28],
               [36, 75, 76, 55, 72, 146],
               [142, 110, 192, 243, 459, 401]]
    num_classes = 3
    H = W = 64          # feature maps of 8x8, 4x4, 2x2 (strides 8/16/32)
    batch = 2

    key, khead = jax.random.split(key)
    head = YoloV7HeadPallas(in_channels_list, anchors, num_classes, khead)

    xs = []
    for cin, s in zip(in_channels_list, [8, 16, 32]):
        key, kx = jax.random.split(key)
        xs.append(jax.random.normal(kx, (batch, cin, H // s, W // s), jnp.float32))

    # --- default path: exact eval-mode layouts of the PyTorch module ---------
    z_cat, x_list = head(xs, H, W)
    jax.block_until_ready(z_cat)
    for xo in x_list:
        jax.block_until_ready(xo)

    z_ref, x_ref, dec_cm_ref = _reference(head, xs, H, W)
    assert z_cat.shape == z_ref.shape
    assert jnp.allclose(z_cat, z_ref, atol=2e-3, rtol=2e-3), "decoded mismatch"
    for a, b in zip(x_list, x_ref):
        assert jnp.allclose(a, b, atol=2e-3, rtol=2e-3), "raw head mismatch"

    # --- fast inference path: no raw output, no wrapper relayouts ------------
    z_fast, raw_fast = head(xs, H, W, return_raw=False, channel_major=True)
    for zi in z_fast:
        jax.block_until_ready(zi)
    assert raw_fast is None
    for a, b in zip(z_fast, dec_cm_ref):
        assert jnp.allclose(a, b, atol=2e-3, rtol=2e-3), "fast-path decode mismatch"

    print("KERNEL_OK")
</pallas_src>

<mosaic_0001>
module attributes {stable_mosaic.version = 11 : i64} {
  func.func @_head_kernel(%arg0: i32, %arg1: i32, %arg2: memref<1x16x128xbf16, #tpu.memory_space<vmem>>, %arg3: memref<24x16xbf16, #tpu.memory_space<vmem>>, %arg4: memref<24x8xf32, #tpu.memory_space<vmem>>, %arg5: memref<1x24x128xf32, #tpu.memory_space<vmem>>, %arg6: memref<1x24x128xf32, #tpu.memory_space<vmem>>) attributes {dimension_semantics = [#tpu.dimension_semantics<parallel>, #tpu.dimension_semantics<parallel>], iteration_bounds = array<i64: 2, 1>, scalar_prefetch = 0 : i64, scratch_operands = 0 : i64, tpu.core_type = #tpu.core_type<tc>, window_params = [{transform_indices = @transform_0, window_bounds = array<i64: 1, 16, 128>}, {pipeline_mode = #tpu.pipeline_mode<synchronous>, transform_indices = @transform_1, window_bounds = array<i64: 24, 16>}, {pipeline_mode = #tpu.pipeline_mode<synchronous>, transform_indices = @transform_2, window_bounds = array<i64: 24, 8>}, {transform_indices = @transform_3, window_bounds = array<i64: 1, 24, 128>}, {transform_indices = @transform_4, window_bounds = array<i64: 1, 24, 128>}]} {
    %c0 = arith.constant 0 : index
    %c0_0 = arith.constant 0 : index
    %0 = vector.load %arg4[%c0, %c0_0] : memref<24x8xf32, #tpu.memory_space<vmem>>, vector<24x8xf32>
    %1 = vector.extract_strided_slice %0 {offsets = [0, 0], sizes = [24, 1], strides = [1, 1]} : vector<24x8xf32> to vector<24x1xf32>
    %2 = vector.extract_strided_slice %0 {offsets = [0, 1], sizes = [24, 1], strides = [1, 1]} : vector<24x8xf32> to vector<24x1xf32>
    %3 = vector.extract_strided_slice %0 {offsets = [0, 2], sizes = [24, 1], strides = [1, 1]} : vector<24x8xf32> to vector<24x1xf32>
    %4 = vector.extract_strided_slice %0 {offsets = [0, 3], sizes = [24, 1], strides = [1, 1]} : vector<24x8xf32> to vector<24x1xf32>
    %5 = vector.extract_strided_slice %0 {offsets = [0, 4], sizes = [24, 1], strides = [1, 1]} : vector<24x8xf32> to vector<24x1xf32>
    %c0_1 = arith.constant 0 : index
    %c0_2 = arith.constant 0 : index
    %6 = vector.load %arg3[%c0_1, %c0_2] : memref<24x16xbf16, #tpu.memory_space<vmem>>, vector<24x16xbf16>
    %c0_3 = arith.constant 0 : index
    %c0_4 = arith.constant 0 : index
    %c0_5 = arith.constant 0 : index
    %7 = vector.load %arg2[%c0_3, %c0_4, %c0_5] : memref<1x16x128xbf16, #tpu.memory_space<vmem>>, vector<1x16x128xbf16>
    %8 = vector.shape_cast %7 : vector<1x16x128xbf16> to vector<16x128xbf16>
    %cst = arith.constant dense<0.000000e+00> : vector<24x128xf32>
    %9 = tpu.matmul %6, %8, %cst {dimension_numbers = #tpu.dot_dimension_numbers<[1], [0], [0], [1], [0, 0, 1, 1], [], []>} : vector<24x16xbf16>, vector<16x128xbf16>, vector<24x128xf32> -> vector<24x128xf32>
    %10 = vector.broadcast %1 : vector<24x1xf32> to vector<24x128xf32>
    %11 = arith.addf %9, %10 : vector<24x128xf32>
    %c0_6 = arith.constant 0 : index
    %c0_7 = arith.constant 0 : index
    %c0_8 = arith.constant 0 : index
    %12 = vector.load %arg5[%c0_6, %c0_7, %c0_8] : memref<1x24x128xf32, #tpu.memory_space<vmem>>, vector<1x24x128xf32>
    %13 = vector.shape_cast %12 : vector<1x24x128xf32> to vector<24x128xf32>
    %14 = vector.shape_cast %11 : vector<24x128xf32> to vector<1x24x128xf32>
    tpu.vector_store %arg5[%c0_6, %c0_7, %c0_8], %14 {strides = array<i32>} : memref<1x24x128xf32, #tpu.memory_space<vmem>>, vector<1x24x128xf32>,
    %15 = arith.negf %11 : vector<24x128xf32>
    %16 = math.exp %15 : vector<24x128xf32>
    %cst_9 = arith.constant 1.000000e+00 : f32
    %17 = vector.broadcast %cst_9 : f32 to vector<24x128xf32>
    %18 = arith.addf %17, %16 : vector<24x128xf32>
    %19 = arith.divf %17, %18 : vector<24x128xf32>
    %20 = tpu.iota {dimensions = array<i32: 1>} : vector<1x128xi32>
    %c128_i32 = arith.constant 128 : i32
    %21 = arith.muli %arg1, %c128_i32 : i32
    %22 = vector.broadcast %21 : i32 to vector<1x128xi32>
    %23 = arith.addi %20, %22 : vector<1x128xi32>
    %24 = arith.sitofp %23 : vector<1x128xi32> to vector<1x128xf32>
    %cst_10 = arith.constant 5.000000e-01 : f32
    %25 = vector.broadcast %cst_10 : f32 to vector<1x128xf32>
    %26 = arith.addf %24, %25 : vector<1x128xf32>
    %cst_11 = arith.constant 1.250000e-01 : f32
    %27 = vector.broadcast %cst_11 : f32 to vector<1x128xf32>
    %28 = arith.mulf %26, %27 : vector<1x128xf32>
    %29 = math.floor %28 : vector<1x128xf32>
    %cst_12 = arith.constant 8.000000e+00 : f32
    %30 = vector.broadcast %cst_12 : f32 to vector<1x128xf32>
    %31 = arith.mulf %29, %30 : vector<1x128xf32>
    %32 = arith.subf %24, %31 : vector<1x128xf32>
    %cst_13 = arith.constant 1.000000e+00 : f32
    %33 = vector.broadcast %cst_13 : f32 to vector<1x128xf32>
    %34 = arith.subf %32, %33 : vector<1x128xf32>
    %cst_14 = arith.constant 8.000000e+00 : f32
    %35 = vector.broadcast %cst_14 : f32 to vector<1x128xf32>
    %36 = arith.mulf %34, %35 : vector<1x128xf32>
    %37 = vector.broadcast %4 : vector<24x1xf32> to vector<24x128xf32>
    %38 = vector.broadcast %36 : vector<1x128xf32> to vector<24x128xf32>
    %39 = arith.mulf %37, %38 : vector<24x128xf32>
    %cst_15 = arith.constant 1.000000e+00 : f32
    %40 = vector.broadcast %cst_15 : f32 to vector<1x128xf32>
    %41 = arith.subf %29, %40 : vector<1x128xf32>
    %cst_16 = arith.constant 8.000000e+00 : f32
    %42 = vector.broadcast %cst_16 : f32 to vector<1x128xf32>
    %43 = arith.mulf %41, %42 : vector<1x128xf32>
    %44 = vector.broadcast %5 : vector<24x1xf32> to vector<24x128xf32>
    %45 = vector.broadcast %43 : vector<1x128xf32> to vector<24x128xf32>
    %46 = arith.mulf %44, %45 : vector<24x128xf32>
    %47 = arith.addf %39, %46 : vector<24x128xf32>
    %cst_17 = arith.constant 5.000000e-01 : f32
    %48 = vector.broadcast %cst_17 : f32 to vector<24x1xf32>
    %49 = arith.cmpf ogt, %3, %48 : vector<24x1xf32>
    %50 = arith.mulf %19, %19 : vector<24x128xf32>
    %51 = vector.broadcast %2 : vector<24x1xf32> to vector<24x128xf32>
    %52 = arith.mulf %50, %51 : vector<24x128xf32>
    %53 = vector.broadcast %2 : vector<24x1xf32> to vector<24x128xf32>
    %54 = arith.mulf %19, %53 : vector<24x128xf32>
    %55 = arith.addf %54, %47 : vector<24x128xf32>
    %56 = vector.shape_cast %49 : vector<24x1xi1> to vector<24x1xi1>
    %57 = vector.broadcast %56 : vector<24x1xi1> to vector<24x128xi1>
    %58 = arith.select %57, %52, %55 : vector<24x128xi1>, vector<24x128xf32>
    %c0_18 = arith.constant 0 : index
    %c0_19 = arith.constant 0 : index
    %c0_20 = arith.constant 0 : index
    %59 = vector.load %arg6[%c0_18, %c0_19, %c0_20] : memref<1x24x128xf32, #tpu.memory_space<vmem>>, vector<1x24x128xf32>
    %60 = vector.shape_cast %59 : vector<1x24x128xf32> to vector<24x128xf32>
    %61 = vector.shape_cast %58 : vector<24x128xf32> to vector<1x24x128xf32>
    tpu.vector_store %arg6[%c0_18, %c0_19, %c0_20], %61 {strides = array<i32>} : memref<1x24x128xf32, #tpu.memory_space<vmem>>, vector<1x24x128xf32>,
    return
  }
  func.func @transform_0(%arg0: i32, %arg1: i32) -> (i32, i32, i32) {
    %c0_i32 = arith.constant 0 : i32
    %c0_i32_0 = arith.constant 0 : i32
    return %arg0, %c0_i32, %arg1 : i32, i32, i32
  }
  func.func @transform_1(%arg0: i32, %arg1: i32) -> (i32, i32) {
    %c0_i32 = arith.constant 0 : i32
    %c0_i32_0 = arith.constant 0 : i32
    %c0_i32_1 = arith.constant 0 : i32
    return %c0_i32, %c0_i32_0 : i32, i32
  }
  func.func @transform_2(%arg0: i32, %arg1: i32) -> (i32, i32) {
    %c0_i32 = arith.constant 0 : i32
    %c0_i32_0 = arith.constant 0 : i32
    %c0_i32_1 = arith.constant 0 : i32
    return %c0_i32, %c0_i32_0 : i32, i32
  }
  func.func @transform_3(%arg0: i32, %arg1: i32) -> (i32, i32, i32) {
    %c0_i32 = arith.constant 0 : i32
    %c0_i32_0 = arith.constant 0 : i32
    return %arg0, %c0_i32, %arg1 : i32, i32, i32
  }
  func.func @transform_4(%arg0: i32, %arg1: i32) -> (i32, i32, i32) {
    %c0_i32 = arith.constant 0 : i32
    %c0_i32_0 = arith.constant 0 : i32
    return %arg0, %c0_i32, %arg1 : i32, i32, i32
  }
}

</mosaic_0001>

<bundles_post_ra>
// kernel: tpu_custom_call.1
= control target key start
LH: loop header
LB: loop body
LE: loop exit
PB: predicated region body
PF: predicated region fallthrough
CT: control target
= control target key end

     0   :  { %10 = vsyncpa [#allocation3], 0  ;;  %s1049_s0 = inlined_call_operand.vmem [shape: bf16[2,16,128], index: 0, kind: input, shape index: {}]   ;;  %s1050_s1 = inlined_call_operand.vmem [shape: bf16[24,16], index: 1, kind: input, shape index: {}]   ;;  %s1051_s2 = inlined_call_operand.vmem [shape: f32[24,8], index: 2, kind: input, shape index: {}]   ;;  %s1052_s3 = inlined_call_operand.hbm [shape: f32[2,24,128], index: 3, kind: output, shape index: {0}]   ;;  %s1053_s4 = inlined_call_operand.hbm [shape: f32[2,24,128], index: 4, kind: output, shape index: {1}]  }
   0x1   :  { %12 = vsyncpa [#allocation3 + $0x1], 0 }
   0x2   :  { %13 = vsyncpa [#allocation5], 0 }
   0x3   :  { %15 = vsyncpa [#allocation5 + $0x1], 0  ;;  %s861_s15 = smov 0   ;;  %s863_s16 = smov 0  }
   0x4   :  { %s865_s17 = smov 0   ;;  %s867_s18 = smov 0  }
   0x5   :  { %s869_s19 = smov 0   ;;  %s871_s20 = smov 0  }
   0x6 LB: > { %s593_s21 = sadd.s32 4294967295, %s825_s20   ;;  %s594_s22 = sadd.s32 4294967294, %s825_s20   ;;  %s825_s20 = sphi %s871_s20, %s21_s20   ;;  %s821_s19 = sphi %s869_s19, %s1060_s19   ;;  %s817_s18 = sphi %s867_s18, %s1059_s18   ;;  %s813_s17 = sphi %s865_s17, %s1058_s17   ;;  %s809_s16 = sphi %s863_s16, %s1057_s16   ;;  %s805_s15 = sphi %s861_s15, %s1056_s15  }
   0x7   : > { %s33_s23 = sadd.s32 1, %s821_s19  ;;  %s112_s24 = sadd.s32 1, %s813_s17 }
   0x8   : > { %p35_p0 = scmp.ge.s32.totalorder %s33_s23, 2  ;;  %p122_p1 = scmp.ne.s32.totalorder %s813_s17, %s809_s16 }
   0x9   : > { %p123_p2 = scmp.eq.s32.totalorder %s593_s21, 1  ;;  %p128_p3 = scmp.ne.s32.totalorder %s809_s16, %s805_s15 }
   0xa   : > { %s1062_s23 = smov (%p35_p0, %s33_s23), 0  ;;  %p129_p5 = scmp.eq.s32.totalorder %s594_s22, 1 }
   0xb   : > { %p901_p4 = por %p123_p2, %p122_p1  ;;  %s107_s26 = ssub.s32 %s821_s19, %s1062_s23 }
   0xc   : > { %p597_p6 = scmp.ge.s32.totalorder %s825_s20, 1  ;;  %p110_p7 = scmp.eq.s32.totalorder %s107_s26, 0 }
   0xd   : > { %p908_p8 = por %p129_p5, %p128_p3  ;;  %p192_p9 = scmp.lt.s32.totalorder %s825_s20, 3 }
   0xe   : > { %s914_s28 = scalar_select %p110_p7, %s813_s17, %s112_s24  }
   0xf   : > { %p193_p10 = pnand %p597_p6, %p192_p9 }
  0x10   : > { %p226_p11 = scmp.lt.s32.totalorder (!%p193_p10), %s817_s18, 1  ;;  %s941_s26 = sand.u32 (!%p193_p10), 1, %s809_s16  }
  0x11   : > { %196 = sbr.rel (%p193_p10) target bundleno = 292 (0x124), region = 32  ;;  %s832_s12 = smov (!%p193_p10), [#allocation2]  }
  0x12   : > { %s624_s29 = smul.u32 (!%p193_p10), 24, %s941_s26 }
  0x13   : > { %s625_s30 = smul.u32 (!%p193_p10), 384, %s817_s18 }
  0x15   : > { %s961_s9 = scalar_lea.hbm (!%p193_p10), %s1052_s3, %s625_s30 }
  0x16   : > { %v705_v0 = vld [vmem:[%s1050_s1] sm:$0xff]   ;;  %vm272_vm0 = vcmask 130048   ;;  %s227_s5 = scalar_select %p226_p11, %s817_s18, 1  ;;  %v827_v1 = vmov 0   ;;  %v237_v2 = vld [vmem:[%s1051_s2 + $0x10] sm:$0xff]  ;;  %v236_v4 = vld [vmem:[%s1051_s2 + $0x8] sm:$0xff]  ;;  %v348_v15 = vlaneseq }
  0x17   : > { %620 = vmatprep.mubr.msk.bf16.mxu0 %vm272_vm0, %v705_v0  ;;  %695 = vset.pattern.permute.xlu1 %v827_v1  ;;  %v235_v3 = vld [vmem:[%s1051_s2] sm:$0xff]  ;;  %v828_v6 = vmov 3   ;;  %v706_v7 = vld [vmem:[%s1050_s1 + $0x8] ss:$0 sps:$4 sm:$0xff]   ;;  %v829_v8 = vmov 4   ;;  %v830_v9 = vmov 1  }
  0x18   : > { %255 = vperm.xlu1 %695, %v237_v2   ;;  %694 = vset.pattern.permute.xlu0 %v827_v1  ;;  %s614_s10 = sshll.u32 %s227_s5, 3  ;;  %vm397_vm1 = vcmp.gt.f32.partialorder %v236_v4, 0.5  ;;  %v831_v11 = vmov 2   ;;  %vm396_vm2 = vcmp.gt.f32.partialorder %v235_v3, 0.5  ;;  %vm398_vm3 = vcmp.gt.f32.partialorder %v237_v2, 0.5  ;;  %s218_s5 = scalar_lea.vmem [#allocation2], %s624_s29 }
  0x19   : > { %245 = vperm.xlu0 %694, %v235_v3   ;;  %s233_s13 = scalar_lea.vmem %s1049_s0, %s614_s10  ;;  %v424_v10 = vsel %vm397_vm1, 1, %v827_v1  ;;  %v423_v12 = vsel %vm396_vm2, 1, %v827_v1  ;;  %v425_v13 = vsel %vm398_vm3, 1, %v827_v1  ;;  %v943_v17 = vand.u32 127, %v348_v15  ;;  %s464_s6 = sshll.u32 %s218_s5, 4  ;;  %s954_s6 = int_to_ptr.vmem [resolvable:$true] %s464_s6 }
  0x1a   : > { %v704_v5 = vld [vmem:[%s233_s13] sm:$0xff]   ;;  %s445_s10 = scalar_lea.sflag [#allocation3], %s941_s26  ;;  %s719_s11 = scalar_lea.vmem %s954_s6, 384 }
  0x1b   : > { %618 = vmatprep.subr.bf16.mxu0 %v704_v5  ;;  %v353_v18 = vcvt.s32.f32 %v943_v17  ;;  %p720_p12 = scmp.ne.s32.totalorder %s954_s6, %s719_s11  ;;  %s723_s13 = sshll.u32 %s832_s12, 4  ;;  %s724_s13 = int_to_ptr.vmem [resolvable:$false] %s723_s13 }
  0x1c   : > { %696 = vset.pattern.permute.xlu1 %v828_v6  ;;  %619 = vmatpush3.bf16.msra.mxu0 %v704_v5  ;;  %s725_s14 = scalar_lea.vmem %s724_s13, 768  ;;  %p726_p1 = scmp.lt.s32.totalorder %s954_s6, %s724_s13 }
  0x1d   : > { %362 = vperm.xlu1 %696, %v235_v3   ;;  %250 = vperm.xlu0 %694, %v236_v4   ;;  %v354_v24 = vadd.f32 0.5, %v353_v18  ;;  %p721_p13 = pnand %p720_p12, %p901_p4  ;;  %p727_p2 = scmp.lt.s32.totalorder %s725_s14, %s719_s11 }
  0x1f   : > { %621 = vmatmul.mubr.msk.bf16.vlgmr.msra.gmra.mxu0 %vm272_vm0, %v706_v7  ;;  %v355_v32 = vmul.f32 0.125, %v354_v24  ;;  %p722_p0 = pneg %p721_p13  ;;  %p728_p3 = por %p727_p2, %p726_p1 }
  0x21   : > { %370 = vperm.xlu1 %696, %v237_v2   ;;  %697 = vset.pattern.permute.xlu0 %v828_v6  ;;  %p729_p5 = pnand %p728_p3, %p722_p0 }
  0x22   : > { %366 = vperm.xlu0 %697, %v236_v4  }
  0x25   : > { %698 = vset.pattern.permute.xlu1 %v829_v8 }
  0x26   : > { %379 = vperm.xlu1 %698, %v235_v3   ;;  %699 = vset.pattern.permute.xlu0 %v829_v8 }
  0x27   : > { %383 = vperm.xlu0 %699, %v236_v4  }
  0x2a   : > { %387 = vperm.xlu1 %698, %v237_v2  }
  0x2b   : > { %701 = vset.pattern.permute.xlu0 %v830_v9 }
  0x2c   : > { %407 = vperm.xlu0 %701, %v236_v4  }
  0x2e   : > { %700 = vset.pattern.permute.xlu1 %v830_v9 }
  0x2f   : > { %403 = vperm.xlu1 %700, %v235_v3  }
  0x30   : > { %703 = vset.pattern.permute.xlu0 %v831_v11 }
  0x31   : > { %430 = vperm.xlu0 %703, %v424_v10  }
  0x33   : > { %411 = vperm.xlu1 %700, %v237_v2  }
  0x37   : > { %702 = vset.pattern.permute.xlu1 %v831_v11 }
  0x38   : > { %427 = vperm.xlu1 %702, %v423_v12  }
  0x3c   : > { %433 = vperm.xlu1 %702, %v425_v13  }
  0x93   : > { %v256_v14 = vpop.permute.xlu1 %255 }
  0x94   : > { %v246_v20 = vpop.permute.xlu0 %245 }
  0x98   : > { %v938_v16 = vpop.permute.xlu1 %362  ;;  %v251_v30 = vpop.permute.xlu0 %250 }
  0x9c   : > { %v947_v19 = vpop.permute.xlu1 %370 }
  0xa1   : > { %v952_v29 = vpop.permute.xlu1 %379 }
  0xdf   : > { %v622_v21 = vpop.f32.mrf.mxu0 }
  0xe0   : > { %v322_v22 = vadd.f32 %v622_v21, %v256_v14 }
  0xe1   : > { %v313_v23 = vpop.f32.mrf.mxu0 }
  0xe2   : > { %329 = vst [vmem:[%s218_s5 + $0x10] sm:$0xff] %v322_v22  ;;  %v607_v25 = vmul.f32 -1.442695, %v322_v22  ;;  %v314_v26 = vadd.f32 %v313_v23, %v246_v20 }
  0xe3   : > { %v623_v27 = vpop.f32.mrf.mxu0 }
  0xe4   : > { %707 = vpow2.f32 %v607_v25  ;;  %327 = vst [vmem:[%s218_s5] sm:$0xff] %v314_v26  ;;  %v605_v28 = vmul.f32 -1.442695, %v314_v26 }
  0xe5   : > { %v316_v31 = vpop.f32.mrf.mxu0 }
  0xe6   : > { %709 = vpow2.f32 %v605_v28  ;;  %v317_v33 = vadd.f32 %v316_v31, %v251_v30 }
  0xe8   : > { %328 = vst [vmem:[%s218_s5 + $0x8] sm:$0xff] %v317_v33  ;;  %v606_v34 = vmul.f32 -1.442695, %v317_v33 }
  0xe9   : > { %732 = shalt.err (!%p729_p5)
}
  0xea   : > { %s733_s21 = scalar_lea.hbm %s961_s9, 384  ;;  %s737_s5 = scalar_lea.hbm %s1052_s3, 768 }
  0xeb   : > { %p734_p6 = scmp.ne.s32.totalorder %s961_s9, %s733_s21  ;;  %p738_p10 = scmp.lt.s32.totalorder %s961_s9, %s1052_s3 }
  0xec   : > { %p739_p11 = scmp.lt.s32.totalorder %s737_s5, %s733_s21 }
  0xed   : > { %p735_p7 = pnand %p734_p6, %p901_p4 }
  0xee   : > { %p740_p12 = por %p739_p11, %p738_p10 }
  0xef   : > { %p736_p9 = pneg %p735_p7 }
  0xf1   : > { %p741_p13 = pnand %p740_p12, %p736_p9 }
  0xf3   : > { %744 = shalt.err (!%p741_p13)
}
  0xf4   : > { %s833_s11 = smov 128   ;;  %s834_s12 = smov 8   ;;  %v356_v35 = vfloor.f32 %v355_v32  ;;  %711 = vpow2.f32 %v606_v34  ;;  %v388_v36 = vpop.permute.xlu1 %387  ;;  %v708_v39 = vpop.eup %707 }
  0xf5   : > { %627 = dma.vmem_to_hbm [thread:$0]  (%p901_p4), %s954_s6, 384, %s961_s9, %s445_s10, %s833_s11, %s833_s11, %s834_s12   ;;  %v341_v41 = vadd.f32 1.0, %v708_v39  ;;  %v710_v42 = vpop.eup %709  ;;  %v367_v47 = vpop.permute.xlu0 %366 }
  0xf6   : > { %v357_v37 = vmul.f32 8.0, %v356_v35  ;;  %v339_v43 = vadd.f32 1.0, %v710_v42  ;;  %v609_v46 = vadd.f32 -1.0, %v356_v35  ;;  %s225_s6 = scalar_lea.vmem [#allocation4], %s624_s29  ;;  %s1001_s29 = scalar_lea.hbm %s1053_s4, %s625_s30 }
  0xf7   : > { %713 = vrcp.f32 %v341_v41  ;;  %s481_s9 = sshll.u32 %s225_s6, 4  ;;  %s450_s14 = scalar_lea.sflag [#allocation5], %s941_s26  ;;  %s994_s9 = int_to_ptr.vmem [resolvable:$true] %s481_s9 }
  0xf8   : > { %v404_v38 = vpop.permute.xlu1 %403  ;;  %v358_v40 = vsub.f32 %v353_v18, %v357_v37  ;;  %715 = vrcp.f32 %v339_v43  ;;  %v377_v51 = vmul.f32 8.0, %v609_v46  ;;  %s745_s21 = scalar_lea.vmem %s994_s9, 384  ;;  %s835_s22 = smov [#allocation4]  }
  0xf9   : > { %v384_v53 = vpop.permute.xlu0 %383  ;;  %p746_p0 = scmp.ne.s32.totalorder %s994_s9, %s745_s21  ;;  %s749_s24 = sshll.u32 %s835_s22, 4  ;;  %s750_s24 = int_to_ptr.vmem [resolvable:$false] %s749_s24 }
  0xfa   : > { %v608_v45 = vadd.f32 -1.0, %v358_v40  ;;  %v392_v55 = vmul.f32 %v388_v36, %v377_v51  ;;  %v390_v57 = vmul.f32 %v952_v29, %v377_v51  ;;  %v391_v3 = vmul.f32 %v384_v53, %v377_v51  ;;  %s751_s18 = scalar_lea.vmem %s750_s24, 768  ;;  %p752_p3 = scmp.lt.s32.totalorder %s994_s9, %s750_s24 }
  0xfb   : > { %p747_p1 = pnand %p746_p0, %p901_p4  ;;  %p753_p5 = scmp.lt.s32.totalorder %s751_s18, %s745_s21 }
  0xfc   : > { %v412_v44 = vpop.permute.xlu1 %411  ;;  %v360_v50 = vmul.f32 8.0, %v608_v45 }
  0xfd   : > { %v408_v59 = vpop.permute.xlu0 %407  ;;  %p748_p2 = pneg %p747_p1  ;;  %p754_p6 = por %p753_p5, %p752_p3 }
  0xfe   : > { %v375_v54 = vmul.f32 %v947_v19, %v360_v50  ;;  %v373_v56 = vmul.f32 %v938_v16, %v360_v50  ;;  %v374_v2 = vmul.f32 %v367_v47, %v360_v50 }
  0xff   : > { %p755_p7 = pnand %p754_p6, %p748_p2 }
 0x100   : > { %v428_v52 = vpop.permute.xlu1 %427  ;;  %v395_v61 = vadd.f32 %v392_v55, %v375_v54  ;;  %v393_v1 = vadd.f32 %v390_v57, %v373_v56  ;;  %v394_v13 = vadd.f32 %v391_v3, %v374_v2 }
 0x101   : > { %v712_v48 = vpop.eup %711  ;;  %vm435_vm5 = vcmp.eq.s32.totalorder %v428_v52, 1  ;;  %v431_v11 = vpop.permute.xlu0 %430 }
 0x102   : > { %v340_v49 = vadd.f32 1.0, %v712_v48  ;;  %vm436_vm6 = vcmp.eq.s32.totalorder %v431_v11, 1 }
 0x104   : > { %717 = vrcp.f32 %v340_v49  ;;  %v434_v58 = vpop.permute.xlu1 %433  ;;  %v714_v60 = vpop.eup %713 }
 0x105   : > { %v401_v62 = vmul.f32 %v714_v60, %v714_v60  ;;  %v419_v63 = vmul.f32 %v714_v60, %v412_v44  ;;  %v716_v0 = vpop.eup %715  ;;  %vm437_vm4 = vcmp.eq.s32.totalorder %v434_v58, 1 }
 0x106   : > { %v399_v4 = vmul.f32 %v716_v0, %v716_v0  ;;  %v417_v5 = vmul.f32 %v716_v0, %v404_v38 }
 0x107   : > { %v416_v6 = vmul.f32 %v412_v44, %v401_v62  ;;  %v422_v7 = vadd.f32 %v419_v63, %v395_v61 }
 0x108   : > { %v414_v8 = vmul.f32 %v404_v38, %v399_v4  ;;  %v420_v9 = vadd.f32 %v417_v5, %v393_v1 }
 0x109   : > { %v440_v10 = vsel %vm437_vm4, %v416_v6, %v422_v7 }
 0x10a   : > { %443 = vst [vmem:[%s225_s6 + $0x10] sm:$0xff] %v440_v10  ;;  %v438_v14 = vsel %vm435_vm5, %v414_v8, %v420_v9 }
 0x10b   : > { %441 = vst [vmem:[%s225_s6] sm:$0xff] %v438_v14 }
 0x111   : > { %v718_v12 = vpop.eup %717 }
 0x112   : > { %v400_v15 = vmul.f32 %v718_v12, %v718_v12  ;;  %v418_v16 = vmul.f32 %v718_v12, %v408_v59 }
 0x114   : > { %v415_v17 = vmul.f32 %v408_v59, %v400_v15  ;;  %v421_v18 = vadd.f32 %v418_v16, %v394_v13 }
 0x116   : > { %v439_v19 = vsel %vm436_vm6, %v415_v17, %v421_v18 }
 0x117   : > { %442 = vst [vmem:[%s225_s6 + $0x8] sm:$0xff] %v439_v19 }
 0x118   : > { %758 = shalt.err (!%p755_p7)
}
 0x119   : > { %s759_s30 = scalar_lea.hbm %s1001_s29, 384  ;;  %s763_s7 = scalar_lea.hbm %s1053_s4, 768 }
 0x11a   : > { %p760_p9 = scmp.ne.s32.totalorder %s1001_s29, %s759_s30  ;;  %p764_p12 = scmp.lt.s32.totalorder %s1001_s29, %s1053_s4 }
 0x11b   : > { %p765_p13 = scmp.lt.s32.totalorder %s763_s7, %s759_s30 }
 0x11c   : > { %p761_p10 = pnand %p760_p9, %p901_p4 }
 0x11d   : > { %p766_p0 = por %p765_p13, %p764_p12 }
 0x11e   : > { %p762_p11 = pneg %p761_p10 }
 0x120   : > { %p767_p1 = pnand %p766_p0, %p762_p11 }
 0x122   : > { %770 = shalt.err (!%p767_p1)
}
 0x123   : > { %628 = dma.vmem_to_hbm [thread:$0]  (%p901_p4), %s994_s9, 384, %s1001_s29, %s450_s14, %s833_s11, %s833_s11, %s834_s12  }
 0x124 PF: > { %p638_p2 = scmp.ge.s32.totalorder %s825_s20, 2  ;;  %s496_s10 = sand.u32 1, %s805_s15  }
 0x125   : > { %s497_s13 = scalar_lea.sflag [#allocation3], %s496_s10 }
 0x126   : > { %p632_p3 = pnand %p638_p2, %p908_p8 }
 0x128   : > { %p633_p5 = pneg %p632_p3 }
 0x12a   : > { %796 = dma.done.wait (%p633_p5), %s497_s13, 384  }
 0x12b   : > { %798 = vsyncadd (%p633_p5), %s497_s13, 4294966912  ;;  %s506_s21 = scalar_lea.sflag [#allocation5], %s496_s10 }
 0x12c   : > { %800 = dma.done.wait (%p633_p5), %s506_s21, 384  }
 0x12d   : > { %802 = vsyncadd (%p633_p5), %s506_s21, 4294966912  ;;  %s21_s20 = sadd.s32 1, %s825_s20   ;;  %s1056_s15 = smov %s809_s16 }
 0x12e   : > { %p18_p6 = scmp.ge.s32.totalorder %s21_s20, 4   ;;  %s1057_s16 = smov %s813_s17 }
 0x12f   : > { %s1058_s17 = smov %s914_s28  ;;  %s1059_s18 = smov %s821_s19 }
 0x130   : > { %s1060_s19 = smov %s1062_s23  ;;  %20 = sbr.rel (!%p18_p6) target bundleno = 6 (0x6), region = 84 }
 0x135   :  { %511 = vsyncpa [#allocation3], 1 }
 0x136   :  { %513 = vsyncpa [#allocation3 + $0x1], 1 }
 0x137   :  { %514 = vsyncpa [#allocation5], 1 }
 0x138   :  { %516 = vsyncpa [#allocation5 + $0x1], 1 }

</bundles_post_ra>
